<compile_context>
chip_gen: v7x
topology: tpu7x:2x2x1
jax: 0.10.0
libtpu: 0.0.40
codegen_flags: <defaults>
</compile_context>

<pallas_src>
import functools

import jax
import jax.numpy as jnp
from jax.experimental import pallas as pl
from jax.experimental.pallas import tpu as pltpu

# Synthetic "__init__ args" (small shapes, consistent with the module).
PREDICATE_NUM = 4
ARITY_NUM = 2
STEPS = 3
ASQ = ARITY_NUM ** 2  # 4

_LANE_GRAN = 8 * 128  # one (sublane, lane) tile worth of batch elements


def _round_up(x, m):
    return ((x + m - 1) // m) * m


def _meta_tail_kernel(x_ref, w_ref, b_ref, o_ref, *, steps, arity, npred):
    """Fused MetaModel tail for one batch tile.

    x_ref : (rows_pad, TBJ, 8, 128) VMEM, batch folded into the last 3 dims.
            rows 0..P*A^2-1         : query  (row p*A^2 + k  = query[b, p, k])
            rows P*A^2..+steps*P-1  : pre_attn (row i*P + p  = pre_attn_i[b, p])
            next `steps` rows       : path_attn (row i       = path_attn[b, i])
    w_ref : (A^2, A^2) SMEM  PyTorch Linear weight (out, in)
    b_ref : (A^2,)     SMEM  PyTorch Linear bias
    o_ref : (A^2, TBJ, 8, 128) VMEM  score (row j = score[b, j])
    """
    asq = arity * arity
    q_off = 0
    a_off = npred * asq
    pa_off = a_off + steps * npred

    # Hoisted single upcast of every reused query row (full-tile converts).
    q = [x_ref[q_off + r].astype(jnp.float32) for r in range(npred * asq)]

    path = None     # list of asq slabs (TBJ,8,128): current composed path matrix
    final = None    # list of asq slabs: path_attn-weighted accumulation

    for i in range(steps):
        a_i = [x_ref[a_off + i * npred + p].astype(jnp.float32)
               for p in range(npred)]

        # matrix_each_step_i[k] = sum_p pre_attn[i, p] * query[:, p, k]
        m = []
        for k in range(asq):
            acc = a_i[0] * q[0 * asq + k]
            for p in range(1, npred):
                acc = acc + a_i[p] * q[p * asq + k]
            m.append(acc)

        if path is None:
            path = m
        else:
            # path_i = matrix_i @ path_{i-1}   (arity x arity, per batch elem)
            new_path = []
            for r in range(arity):
                for c in range(arity):
                    acc = m[r * arity] * path[c]
                    for t in range(1, arity):
                        acc = acc + m[r * arity + t] * path[t * arity + c]
                    new_path.append(acc)
            path = new_path

        # final_path += path_attn[:, i] * path_i
        pa_i = x_ref[pa_off + i].astype(jnp.float32)
        contrib = [pa_i * path[k] for k in range(asq)]
        final = contrib if final is None else [final[k] + contrib[k]
                                               for k in range(asq)]

    # score = final_path @ W.T + b — tiny linear as SMEM-scalar * slab FMAs.
    # Each o_ref[j] store is a dense multiple-of-(8,128) store (no masking).
    for j in range(asq):
        acc = w_ref[j, 0] * final[0]
        for k in range(1, asq):
            acc = acc + w_ref[j, k] * final[k]
        o_ref[j] = (acc + b_ref[j]).astype(o_ref.dtype)


def meta_model_forward(query, pre_attn, path_attn, weight, bias, *,
                       lane_tile=32768, stream_dtype=jnp.bfloat16,
                       out_dtype=None):
    """MetaModel forward (train mode) given the transformer attention outputs.

    query    : (B, P, A^2)    float
    pre_attn : (steps, B, P)  float   (pre_attn_list[i][..., 0])
    path_attn: (B, steps)     float   (path_attn_list[-1][..., 0])
    weight   : (A^2, A^2)     PyTorch Linear weight
    bias     : (A^2,)         PyTorch Linear bias
    lane_tile: batch elements per grid step (rounded to a multiple of 1024)
    stream_dtype: dtype of the packed streamed input (bf16 halves HBM bytes;
                  accumulation is always f32 in-kernel)
    returns  : (B, A^2)       score
    """
    batch, npred, asq = query.shape
    steps = pre_attn.shape[0]
    arity = int(round(asq ** 0.5))
    assert arity * arity == asq, "feature dim must be arity_num**2"
    assert pre_attn.shape == (steps, batch, npred)
    assert path_attn.shape == (batch, steps)
    out_dtype = query.dtype if out_dtype is None else out_dtype

    # ---- pack everything into one batch-last slab (single DMA per step) ----
    # TODO(synk): have the upstream Transformer emit this layout directly to
    # avoid the wrapper-side transpose/concat/pad copies.
    q_t = jnp.transpose(query, (1, 2, 0)).reshape(npred * asq, batch)
    a_t = jnp.transpose(pre_attn, (0, 2, 1)).reshape(steps * npred, batch)
    pa_t = jnp.transpose(path_attn, (1, 0))
    x = jnp.concatenate([q_t, a_t, pa_t], axis=0).astype(stream_dtype)

    rows = x.shape[0]                       # P*A^2 + steps*P + steps
    rows_pad = _round_up(rows, 8)           # 8-divisible sublane count

    tile = max(_LANE_GRAN, (int(lane_tile) // _LANE_GRAN) * _LANE_GRAN)
    tb = min(tile, _round_up(batch, _LANE_GRAN))
    b_pad = _round_up(batch, tb)
    nblk = b_pad // tb
    tbj = tb // _LANE_GRAN
    nbj = b_pad // _LANE_GRAN

    x = jnp.pad(x, ((0, rows_pad - rows), (0, b_pad - batch)))
    x4 = x.reshape(rows_pad, nbj, 8, 128)   # free row-major split

    w_f32 = weight.astype(jnp.float32)
    b_f32 = bias.astype(jnp.float32)

    kernel = functools.partial(_meta_tail_kernel,
                               steps=steps, arity=arity, npred=npred)

    flops_per_elem = (2 * steps * npred * asq          # matrix_each_step
                      + 2 * (steps - 1) * asq * arity  # path chain
                      + 2 * steps * asq                # final_path accumulate
                      + 2 * asq * asq)                 # linear
    bytes_accessed = (x4.size * x4.dtype.itemsize
                      + asq * b_pad * jnp.dtype(out_dtype).itemsize
                      + w_f32.size * 4 + b_f32.size * 4)

    out4 = pl.pallas_call(
        kernel,
        out_shape=jax.ShapeDtypeStruct((asq, nbj, 8, 128), out_dtype),
        grid=(nblk,),
        in_specs=[
            pl.BlockSpec((rows_pad, tbj, 8, 128), lambda i: (0, i, 0, 0)),
            pl.BlockSpec(memory_space=pltpu.MemorySpace.SMEM),  # weight
            pl.BlockSpec(memory_space=pltpu.MemorySpace.SMEM),  # bias
        ],
        out_specs=pl.BlockSpec((asq, tbj, 8, 128), lambda i: (0, i, 0, 0)),
        compiler_params=pltpu.CompilerParams(
            dimension_semantics=("parallel",),
            vmem_limit_bytes=48 * 1024 * 1024),
        cost_estimate=pl.CostEstimate(
            flops=int(flops_per_elem) * int(b_pad),
            transcendentals=0,
            bytes_accessed=int(bytes_accessed)),
    )(x4, w_f32, b_f32)

    out = out4.reshape(asq, b_pad)[:, :batch]           # drop batch padding
    return jnp.transpose(out, (1, 0))                   # (B, A^2)


def _reference_forward(query, pre_attn, path_attn, weight, bias):
    """Pure-JAX re-implementation of MetaModel.forward's post-transformer part."""
    batch, _, asq = query.shape
    steps = pre_attn.shape[0]
    arity = int(round(asq ** 0.5))
    path_list = []
    for i in range(steps):
        attn = pre_attn[i][..., None]                        # (B, P, 1)
        m = (query * attn).sum(1).reshape(batch, arity, arity)
        if path_list:
            path_list.append(jnp.matmul(m, path_list[-1]))
        else:
            path_list.append(m)
    path = jnp.stack(path_list, axis=1).reshape(batch, steps, asq)
    final_path = (path_attn[..., None] * path).sum(1)        # (B, A^2)
    return final_path @ weight.T + bias                      # (B, A^2)


if __name__ == "__main__":
    key = jax.random.PRNGKey(0)
    kq, ka, kp, kw, kb = jax.random.split(key, 5)

    batch = 3
    query = jax.random.normal(kq, (batch, PREDICATE_NUM, ASQ), jnp.float32)

    # TODO(synk): class `Transformer` (predicate_transformer / path_transformer)
    # is not defined in the spec; its attention outputs are synthesized here as
    # softmax distributions with the shapes MetaModel.forward requires.
    pre_attn = jax.nn.softmax(
        jax.random.normal(ka, (STEPS, batch, PREDICATE_NUM), jnp.float32), axis=-1)
    path_attn = jax.nn.softmax(
        jax.random.normal(kp, (batch, STEPS), jnp.float32), axis=-1)

    # nn.Linear(A^2, A^2) params (PyTorch-style uniform init).
    bound = 1.0 / (ASQ ** 0.5)
    weight = jax.random.uniform(kw, (ASQ, ASQ), jnp.float32, -bound, bound)
    bias = jax.random.uniform(kb, (ASQ,), jnp.float32, -bound, bound)

    ref = _reference_forward(query, pre_attn, path_attn, weight, bias)

    # 1) exact f32 streaming path — matches the PyTorch f32 semantics tightly.
    score_f32 = jax.block_until_ready(
        meta_model_forward(query, pre_attn, path_attn, weight, bias,
                           stream_dtype=jnp.float32))
    assert score_f32.shape == (batch, ASQ), score_f32.shape
    assert jnp.allclose(score_f32, ref, atol=1e-4, rtol=1e-4), (score_f32, ref)

    # 2) default bandwidth-optimized bf16-streaming path (f32 accumulation).
    score_bf16 = jax.block_until_ready(
        meta_model_forward(query, pre_attn, path_attn, weight, bias))
    assert score_bf16.shape == (batch, ASQ), score_bf16.shape
    assert jnp.allclose(score_bf16, ref, atol=3e-2, rtol=3e-2), (score_bf16, ref)

    # 3) multi-tile grid exercise (several grid steps over the batch axis).
    batch2 = 2500
    kq2, ka2, kp2 = jax.random.split(jax.random.PRNGKey(1), 3)
    query2 = jax.random.normal(kq2, (batch2, PREDICATE_NUM, ASQ), jnp.float32)
    pre_attn2 = jax.nn.softmax(
        jax.random.normal(ka2, (STEPS, batch2, PREDICATE_NUM), jnp.float32), axis=-1)
    path_attn2 = jax.nn.softmax(
        jax.random.normal(kp2, (batch2, STEPS), jnp.float32), axis=-1)
    ref2 = _reference_forward(query2, pre_attn2, path_attn2, weight, bias)
    score2 = jax.block_until_ready(
        meta_model_forward(query2, pre_attn2, path_attn2, weight, bias,
                           lane_tile=1024, stream_dtype=jnp.float32))
    assert jnp.allclose(score2, ref2, atol=1e-4, rtol=1e-4), (score2, ref2)

    print("KERNEL_OK")
</pallas_src>

<mosaic_0001>
module attributes {stable_mosaic.version = 11 : i64} {
  func.func @_meta_tail_kernel(%arg0: i32, %arg1: memref<32x1x8x128xf32, #tpu.memory_space<vmem>>, %arg2: memref<4x4xf32, #tpu.memory_space<smem>>, %arg3: memref<4xf32, #tpu.memory_space<smem>>, %arg4: memref<4x1x8x128xf32, #tpu.memory_space<vmem>>) attributes {dimension_semantics = [#tpu.dimension_semantics<parallel>], iteration_bounds = array<i64: 1>, scalar_prefetch = 0 : i64, scratch_operands = 0 : i64, tpu.core_type = #tpu.core_type<tc>, window_params = [{transform_indices = @transform_0, window_bounds = array<i64: 32, 1, 8, 128>}, {transform_indices = @transform_1, window_bounds = array<i64: 4, 4>}, {transform_indices = @transform_2, window_bounds = array<i64: 4>}, {transform_indices = @transform_3, window_bounds = array<i64: 4, 1, 8, 128>}]} {
    %c0 = arith.constant 0 : index
    %c0_0 = arith.constant 0 : index
    %c0_1 = arith.constant 0 : index
    %c0_2 = arith.constant 0 : index
    %0 = vector.load %arg1[%c0, %c0_0, %c0_1, %c0_2] : memref<32x1x8x128xf32, #tpu.memory_space<vmem>>, vector<1x1x8x128xf32>
    %1 = vector.shape_cast %0 : vector<1x1x8x128xf32> to vector<1x8x128xf32>
    %c1 = arith.constant 1 : index
    %c0_3 = arith.constant 0 : index
    %c0_4 = arith.constant 0 : index
    %c0_5 = arith.constant 0 : index
    %2 = vector.load %arg1[%c1, %c0_3, %c0_4, %c0_5] : memref<32x1x8x128xf32, #tpu.memory_space<vmem>>, vector<1x1x8x128xf32>
    %3 = vector.shape_cast %2 : vector<1x1x8x128xf32> to vector<1x8x128xf32>
    %c2 = arith.constant 2 : index
    %c0_6 = arith.constant 0 : index
    %c0_7 = arith.constant 0 : index
    %c0_8 = arith.constant 0 : index
    %4 = vector.load %arg1[%c2, %c0_6, %c0_7, %c0_8] : memref<32x1x8x128xf32, #tpu.memory_space<vmem>>, vector<1x1x8x128xf32>
    %5 = vector.shape_cast %4 : vector<1x1x8x128xf32> to vector<1x8x128xf32>
    %c3 = arith.constant 3 : index
    %c0_9 = arith.constant 0 : index
    %c0_10 = arith.constant 0 : index
    %c0_11 = arith.constant 0 : index
    %6 = vector.load %arg1[%c3, %c0_9, %c0_10, %c0_11] : memref<32x1x8x128xf32, #tpu.memory_space<vmem>>, vector<1x1x8x128xf32>
    %7 = vector.shape_cast %6 : vector<1x1x8x128xf32> to vector<1x8x128xf32>
    %c4 = arith.constant 4 : index
    %c0_12 = arith.constant 0 : index
    %c0_13 = arith.constant 0 : index
    %c0_14 = arith.constant 0 : index
    %8 = vector.load %arg1[%c4, %c0_12, %c0_13, %c0_14] : memref<32x1x8x128xf32, #tpu.memory_space<vmem>>, vector<1x1x8x128xf32>
    %9 = vector.shape_cast %8 : vector<1x1x8x128xf32> to vector<1x8x128xf32>
    %c5 = arith.constant 5 : index
    %c0_15 = arith.constant 0 : index
    %c0_16 = arith.constant 0 : index
    %c0_17 = arith.constant 0 : index
    %10 = vector.load %arg1[%c5, %c0_15, %c0_16, %c0_17] : memref<32x1x8x128xf32, #tpu.memory_space<vmem>>, vector<1x1x8x128xf32>
    %11 = vector.shape_cast %10 : vector<1x1x8x128xf32> to vector<1x8x128xf32>
    %c6 = arith.constant 6 : index
    %c0_18 = arith.constant 0 : index
    %c0_19 = arith.constant 0 : index
    %c0_20 = arith.constant 0 : index
    %12 = vector.load %arg1[%c6, %c0_18, %c0_19, %c0_20] : memref<32x1x8x128xf32, #tpu.memory_space<vmem>>, vector<1x1x8x128xf32>
    %13 = vector.shape_cast %12 : vector<1x1x8x128xf32> to vector<1x8x128xf32>
    %c7 = arith.constant 7 : index
    %c0_21 = arith.constant 0 : index
    %c0_22 = arith.constant 0 : index
    %c0_23 = arith.constant 0 : index
    %14 = vector.load %arg1[%c7, %c0_21, %c0_22, %c0_23] : memref<32x1x8x128xf32, #tpu.memory_space<vmem>>, vector<1x1x8x128xf32>
    %15 = vector.shape_cast %14 : vector<1x1x8x128xf32> to vector<1x8x128xf32>
    %c8 = arith.constant 8 : index
    %c0_24 = arith.constant 0 : index
    %c0_25 = arith.constant 0 : index
    %c0_26 = arith.constant 0 : index
    %16 = vector.load %arg1[%c8, %c0_24, %c0_25, %c0_26] : memref<32x1x8x128xf32, #tpu.memory_space<vmem>>, vector<1x1x8x128xf32>
    %17 = vector.shape_cast %16 : vector<1x1x8x128xf32> to vector<1x8x128xf32>
    %c9 = arith.constant 9 : index
    %c0_27 = arith.constant 0 : index
    %c0_28 = arith.constant 0 : index
    %c0_29 = arith.constant 0 : index
    %18 = vector.load %arg1[%c9, %c0_27, %c0_28, %c0_29] : memref<32x1x8x128xf32, #tpu.memory_space<vmem>>, vector<1x1x8x128xf32>
    %19 = vector.shape_cast %18 : vector<1x1x8x128xf32> to vector<1x8x128xf32>
    %c10 = arith.constant 10 : index
    %c0_30 = arith.constant 0 : index
    %c0_31 = arith.constant 0 : index
    %c0_32 = arith.constant 0 : index
    %20 = vector.load %arg1[%c10, %c0_30, %c0_31, %c0_32] : memref<32x1x8x128xf32, #tpu.memory_space<vmem>>, vector<1x1x8x128xf32>
    %21 = vector.shape_cast %20 : vector<1x1x8x128xf32> to vector<1x8x128xf32>
    %c11 = arith.constant 11 : index
    %c0_33 = arith.constant 0 : index
    %c0_34 = arith.constant 0 : index
    %c0_35 = arith.constant 0 : index
    %22 = vector.load %arg1[%c11, %c0_33, %c0_34, %c0_35] : memref<32x1x8x128xf32, #tpu.memory_space<vmem>>, vector<1x1x8x128xf32>
    %23 = vector.shape_cast %22 : vector<1x1x8x128xf32> to vector<1x8x128xf32>
    %c12 = arith.constant 12 : index
    %c0_36 = arith.constant 0 : index
    %c0_37 = arith.constant 0 : index
    %c0_38 = arith.constant 0 : index
    %24 = vector.load %arg1[%c12, %c0_36, %c0_37, %c0_38] : memref<32x1x8x128xf32, #tpu.memory_space<vmem>>, vector<1x1x8x128xf32>
    %25 = vector.shape_cast %24 : vector<1x1x8x128xf32> to vector<1x8x128xf32>
    %c13 = arith.constant 13 : index
    %c0_39 = arith.constant 0 : index
    %c0_40 = arith.constant 0 : index
    %c0_41 = arith.constant 0 : index
    %26 = vector.load %arg1[%c13, %c0_39, %c0_40, %c0_41] : memref<32x1x8x128xf32, #tpu.memory_space<vmem>>, vector<1x1x8x128xf32>
    %27 = vector.shape_cast %26 : vector<1x1x8x128xf32> to vector<1x8x128xf32>
    %c14 = arith.constant 14 : index
    %c0_42 = arith.constant 0 : index
    %c0_43 = arith.constant 0 : index
    %c0_44 = arith.constant 0 : index
    %28 = vector.load %arg1[%c14, %c0_42, %c0_43, %c0_44] : memref<32x1x8x128xf32, #tpu.memory_space<vmem>>, vector<1x1x8x128xf32>
    %29 = vector.shape_cast %28 : vector<1x1x8x128xf32> to vector<1x8x128xf32>
    %c15 = arith.constant 15 : index
    %c0_45 = arith.constant 0 : index
    %c0_46 = arith.constant 0 : index
    %c0_47 = arith.constant 0 : index
    %30 = vector.load %arg1[%c15, %c0_45, %c0_46, %c0_47] : memref<32x1x8x128xf32, #tpu.memory_space<vmem>>, vector<1x1x8x128xf32>
    %31 = vector.shape_cast %30 : vector<1x1x8x128xf32> to vector<1x8x128xf32>
    %c16 = arith.constant 16 : index
    %c0_48 = arith.constant 0 : index
    %c0_49 = arith.constant 0 : index
    %c0_50 = arith.constant 0 : index
    %32 = vector.load %arg1[%c16, %c0_48, %c0_49, %c0_50] : memref<32x1x8x128xf32, #tpu.memory_space<vmem>>, vector<1x1x8x128xf32>
    %33 = vector.shape_cast %32 : vector<1x1x8x128xf32> to vector<1x8x128xf32>
    %c17 = arith.constant 17 : index
    %c0_51 = arith.constant 0 : index
    %c0_52 = arith.constant 0 : index
    %c0_53 = arith.constant 0 : index
    %34 = vector.load %arg1[%c17, %c0_51, %c0_52, %c0_53] : memref<32x1x8x128xf32, #tpu.memory_space<vmem>>, vector<1x1x8x128xf32>
    %35 = vector.shape_cast %34 : vector<1x1x8x128xf32> to vector<1x8x128xf32>
    %c18 = arith.constant 18 : index
    %c0_54 = arith.constant 0 : index
    %c0_55 = arith.constant 0 : index
    %c0_56 = arith.constant 0 : index
    %36 = vector.load %arg1[%c18, %c0_54, %c0_55, %c0_56] : memref<32x1x8x128xf32, #tpu.memory_space<vmem>>, vector<1x1x8x128xf32>
    %37 = vector.shape_cast %36 : vector<1x1x8x128xf32> to vector<1x8x128xf32>
    %c19 = arith.constant 19 : index
    %c0_57 = arith.constant 0 : index
    %c0_58 = arith.constant 0 : index
    %c0_59 = arith.constant 0 : index
    %38 = vector.load %arg1[%c19, %c0_57, %c0_58, %c0_59] : memref<32x1x8x128xf32, #tpu.memory_space<vmem>>, vector<1x1x8x128xf32>
    %39 = vector.shape_cast %38 : vector<1x1x8x128xf32> to vector<1x8x128xf32>
    %40 = arith.mulf %33, %1 : vector<1x8x128xf32>
    %41 = arith.mulf %35, %9 : vector<1x8x128xf32>
    %42 = arith.addf %40, %41 : vector<1x8x128xf32>
    %43 = arith.mulf %37, %17 : vector<1x8x128xf32>
    %44 = arith.addf %42, %43 : vector<1x8x128xf32>
    %45 = arith.mulf %39, %25 : vector<1x8x128xf32>
    %46 = arith.addf %44, %45 : vector<1x8x128xf32>
    %47 = arith.mulf %33, %3 : vector<1x8x128xf32>
    %48 = arith.mulf %35, %11 : vector<1x8x128xf32>
    %49 = arith.addf %47, %48 : vector<1x8x128xf32>
    %50 = arith.mulf %37, %19 : vector<1x8x128xf32>
    %51 = arith.addf %49, %50 : vector<1x8x128xf32>
    %52 = arith.mulf %39, %27 : vector<1x8x128xf32>
    %53 = arith.addf %51, %52 : vector<1x8x128xf32>
    %54 = arith.mulf %33, %5 : vector<1x8x128xf32>
    %55 = arith.mulf %35, %13 : vector<1x8x128xf32>
    %56 = arith.addf %54, %55 : vector<1x8x128xf32>
    %57 = arith.mulf %37, %21 : vector<1x8x128xf32>
    %58 = arith.addf %56, %57 : vector<1x8x128xf32>
    %59 = arith.mulf %39, %29 : vector<1x8x128xf32>
    %60 = arith.addf %58, %59 : vector<1x8x128xf32>
    %61 = arith.mulf %33, %7 : vector<1x8x128xf32>
    %62 = arith.mulf %35, %15 : vector<1x8x128xf32>
    %63 = arith.addf %61, %62 : vector<1x8x128xf32>
    %64 = arith.mulf %37, %23 : vector<1x8x128xf32>
    %65 = arith.addf %63, %64 : vector<1x8x128xf32>
    %66 = arith.mulf %39, %31 : vector<1x8x128xf32>
    %67 = arith.addf %65, %66 : vector<1x8x128xf32>
    %c28 = arith.constant 28 : index
    %c0_60 = arith.constant 0 : index
    %c0_61 = arith.constant 0 : index
    %c0_62 = arith.constant 0 : index
    %68 = vector.load %arg1[%c28, %c0_60, %c0_61, %c0_62] : memref<32x1x8x128xf32, #tpu.memory_space<vmem>>, vector<1x1x8x128xf32>
    %69 = vector.shape_cast %68 : vector<1x1x8x128xf32> to vector<1x8x128xf32>
    %70 = arith.mulf %69, %46 : vector<1x8x128xf32>
    %71 = arith.mulf %69, %53 : vector<1x8x128xf32>
    %72 = arith.mulf %69, %60 : vector<1x8x128xf32>
    %73 = arith.mulf %69, %67 : vector<1x8x128xf32>
    %c20 = arith.constant 20 : index
    %c0_63 = arith.constant 0 : index
    %c0_64 = arith.constant 0 : index
    %c0_65 = arith.constant 0 : index
    %74 = vector.load %arg1[%c20, %c0_63, %c0_64, %c0_65] : memref<32x1x8x128xf32, #tpu.memory_space<vmem>>, vector<1x1x8x128xf32>
    %75 = vector.shape_cast %74 : vector<1x1x8x128xf32> to vector<1x8x128xf32>
    %c21 = arith.constant 21 : index
    %c0_66 = arith.constant 0 : index
    %c0_67 = arith.constant 0 : index
    %c0_68 = arith.constant 0 : index
    %76 = vector.load %arg1[%c21, %c0_66, %c0_67, %c0_68] : memref<32x1x8x128xf32, #tpu.memory_space<vmem>>, vector<1x1x8x128xf32>
    %77 = vector.shape_cast %76 : vector<1x1x8x128xf32> to vector<1x8x128xf32>
    %c22 = arith.constant 22 : index
    %c0_69 = arith.constant 0 : index
    %c0_70 = arith.constant 0 : index
    %c0_71 = arith.constant 0 : index
    %78 = vector.load %arg1[%c22, %c0_69, %c0_70, %c0_71] : memref<32x1x8x128xf32, #tpu.memory_space<vmem>>, vector<1x1x8x128xf32>
    %79 = vector.shape_cast %78 : vector<1x1x8x128xf32> to vector<1x8x128xf32>
    %c23 = arith.constant 23 : index
    %c0_72 = arith.constant 0 : index
    %c0_73 = arith.constant 0 : index
    %c0_74 = arith.constant 0 : index
    %80 = vector.load %arg1[%c23, %c0_72, %c0_73, %c0_74] : memref<32x1x8x128xf32, #tpu.memory_space<vmem>>, vector<1x1x8x128xf32>
    %81 = vector.shape_cast %80 : vector<1x1x8x128xf32> to vector<1x8x128xf32>
    %82 = arith.mulf %75, %1 : vector<1x8x128xf32>
    %83 = arith.mulf %77, %9 : vector<1x8x128xf32>
    %84 = arith.addf %82, %83 : vector<1x8x128xf32>
    %85 = arith.mulf %79, %17 : vector<1x8x128xf32>
    %86 = arith.addf %84, %85 : vector<1x8x128xf32>
    %87 = arith.mulf %81, %25 : vector<1x8x128xf32>
    %88 = arith.addf %86, %87 : vector<1x8x128xf32>
    %89 = arith.mulf %75, %3 : vector<1x8x128xf32>
    %90 = arith.mulf %77, %11 : vector<1x8x128xf32>
    %91 = arith.addf %89, %90 : vector<1x8x128xf32>
    %92 = arith.mulf %79, %19 : vector<1x8x128xf32>
    %93 = arith.addf %91, %92 : vector<1x8x128xf32>
    %94 = arith.mulf %81, %27 : vector<1x8x128xf32>
    %95 = arith.addf %93, %94 : vector<1x8x128xf32>
    %96 = arith.mulf %75, %5 : vector<1x8x128xf32>
    %97 = arith.mulf %77, %13 : vector<1x8x128xf32>
    %98 = arith.addf %96, %97 : vector<1x8x128xf32>
    %99 = arith.mulf %79, %21 : vector<1x8x128xf32>
    %100 = arith.addf %98, %99 : vector<1x8x128xf32>
    %101 = arith.mulf %81, %29 : vector<1x8x128xf32>
    %102 = arith.addf %100, %101 : vector<1x8x128xf32>
    %103 = arith.mulf %75, %7 : vector<1x8x128xf32>
    %104 = arith.mulf %77, %15 : vector<1x8x128xf32>
    %105 = arith.addf %103, %104 : vector<1x8x128xf32>
    %106 = arith.mulf %79, %23 : vector<1x8x128xf32>
    %107 = arith.addf %105, %106 : vector<1x8x128xf32>
    %108 = arith.mulf %81, %31 : vector<1x8x128xf32>
    %109 = arith.addf %107, %108 : vector<1x8x128xf32>
    %110 = arith.mulf %88, %46 : vector<1x8x128xf32>
    %111 = arith.mulf %95, %60 : vector<1x8x128xf32>
    %112 = arith.addf %110, %111 : vector<1x8x128xf32>
    %113 = arith.mulf %88, %53 : vector<1x8x128xf32>
    %114 = arith.mulf %95, %67 : vector<1x8x128xf32>
    %115 = arith.addf %113, %114 : vector<1x8x128xf32>
    %116 = arith.mulf %102, %46 : vector<1x8x128xf32>
    %117 = arith.mulf %109, %60 : vector<1x8x128xf32>
    %118 = arith.addf %116, %117 : vector<1x8x128xf32>
    %119 = arith.mulf %102, %53 : vector<1x8x128xf32>
    %120 = arith.mulf %109, %67 : vector<1x8x128xf32>
    %121 = arith.addf %119, %120 : vector<1x8x128xf32>
    %c29 = arith.constant 29 : index
    %c0_75 = arith.constant 0 : index
    %c0_76 = arith.constant 0 : index
    %c0_77 = arith.constant 0 : index
    %122 = vector.load %arg1[%c29, %c0_75, %c0_76, %c0_77] : memref<32x1x8x128xf32, #tpu.memory_space<vmem>>, vector<1x1x8x128xf32>
    %123 = vector.shape_cast %122 : vector<1x1x8x128xf32> to vector<1x8x128xf32>
    %124 = arith.mulf %123, %112 : vector<1x8x128xf32>
    %125 = arith.mulf %123, %115 : vector<1x8x128xf32>
    %126 = arith.mulf %123, %118 : vector<1x8x128xf32>
    %127 = arith.mulf %123, %121 : vector<1x8x128xf32>
    %128 = arith.addf %70, %124 : vector<1x8x128xf32>
    %129 = arith.addf %71, %125 : vector<1x8x128xf32>
    %130 = arith.addf %72, %126 : vector<1x8x128xf32>
    %131 = arith.addf %73, %127 : vector<1x8x128xf32>
    %c24 = arith.constant 24 : index
    %c0_78 = arith.constant 0 : index
    %c0_79 = arith.constant 0 : index
    %c0_80 = arith.constant 0 : index
    %132 = vector.load %arg1[%c24, %c0_78, %c0_79, %c0_80] : memref<32x1x8x128xf32, #tpu.memory_space<vmem>>, vector<1x1x8x128xf32>
    %133 = vector.shape_cast %132 : vector<1x1x8x128xf32> to vector<1x8x128xf32>
    %c25 = arith.constant 25 : index
    %c0_81 = arith.constant 0 : index
    %c0_82 = arith.constant 0 : index
    %c0_83 = arith.constant 0 : index
    %134 = vector.load %arg1[%c25, %c0_81, %c0_82, %c0_83] : memref<32x1x8x128xf32, #tpu.memory_space<vmem>>, vector<1x1x8x128xf32>
    %135 = vector.shape_cast %134 : vector<1x1x8x128xf32> to vector<1x8x128xf32>
    %c26 = arith.constant 26 : index
    %c0_84 = arith.constant 0 : index
    %c0_85 = arith.constant 0 : index
    %c0_86 = arith.constant 0 : index
    %136 = vector.load %arg1[%c26, %c0_84, %c0_85, %c0_86] : memref<32x1x8x128xf32, #tpu.memory_space<vmem>>, vector<1x1x8x128xf32>
    %137 = vector.shape_cast %136 : vector<1x1x8x128xf32> to vector<1x8x128xf32>
    %c27 = arith.constant 27 : index
    %c0_87 = arith.constant 0 : index
    %c0_88 = arith.constant 0 : index
    %c0_89 = arith.constant 0 : index
    %138 = vector.load %arg1[%c27, %c0_87, %c0_88, %c0_89] : memref<32x1x8x128xf32, #tpu.memory_space<vmem>>, vector<1x1x8x128xf32>
    %139 = vector.shape_cast %138 : vector<1x1x8x128xf32> to vector<1x8x128xf32>
    %140 = arith.mulf %133, %1 : vector<1x8x128xf32>
    %141 = arith.mulf %135, %9 : vector<1x8x128xf32>
    %142 = arith.addf %140, %141 : vector<1x8x128xf32>
    %143 = arith.mulf %137, %17 : vector<1x8x128xf32>
    %144 = arith.addf %142, %143 : vector<1x8x128xf32>
    %145 = arith.mulf %139, %25 : vector<1x8x128xf32>
    %146 = arith.addf %144, %145 : vector<1x8x128xf32>
    %147 = arith.mulf %133, %3 : vector<1x8x128xf32>
    %148 = arith.mulf %135, %11 : vector<1x8x128xf32>
    %149 = arith.addf %147, %148 : vector<1x8x128xf32>
    %150 = arith.mulf %137, %19 : vector<1x8x128xf32>
    %151 = arith.addf %149, %150 : vector<1x8x128xf32>
    %152 = arith.mulf %139, %27 : vector<1x8x128xf32>
    %153 = arith.addf %151, %152 : vector<1x8x128xf32>
    %154 = arith.mulf %133, %5 : vector<1x8x128xf32>
    %155 = arith.mulf %135, %13 : vector<1x8x128xf32>
    %156 = arith.addf %154, %155 : vector<1x8x128xf32>
    %157 = arith.mulf %137, %21 : vector<1x8x128xf32>
    %158 = arith.addf %156, %157 : vector<1x8x128xf32>
    %159 = arith.mulf %139, %29 : vector<1x8x128xf32>
    %160 = arith.addf %158, %159 : vector<1x8x128xf32>
    %161 = arith.mulf %133, %7 : vector<1x8x128xf32>
    %162 = arith.mulf %135, %15 : vector<1x8x128xf32>
    %163 = arith.addf %161, %162 : vector<1x8x128xf32>
    %164 = arith.mulf %137, %23 : vector<1x8x128xf32>
    %165 = arith.addf %163, %164 : vector<1x8x128xf32>
    %166 = arith.mulf %139, %31 : vector<1x8x128xf32>
    %167 = arith.addf %165, %166 : vector<1x8x128xf32>
    %168 = arith.mulf %146, %112 : vector<1x8x128xf32>
    %169 = arith.mulf %153, %118 : vector<1x8x128xf32>
    %170 = arith.addf %168, %169 : vector<1x8x128xf32>
    %171 = arith.mulf %146, %115 : vector<1x8x128xf32>
    %172 = arith.mulf %153, %121 : vector<1x8x128xf32>
    %173 = arith.addf %171, %172 : vector<1x8x128xf32>
    %174 = arith.mulf %160, %112 : vector<1x8x128xf32>
    %175 = arith.mulf %167, %118 : vector<1x8x128xf32>
    %176 = arith.addf %174, %175 : vector<1x8x128xf32>
    %177 = arith.mulf %160, %115 : vector<1x8x128xf32>
    %178 = arith.mulf %167, %121 : vector<1x8x128xf32>
    %179 = arith.addf %177, %178 : vector<1x8x128xf32>
    %c30 = arith.constant 30 : index
    %c0_90 = arith.constant 0 : index
    %c0_91 = arith.constant 0 : index
    %c0_92 = arith.constant 0 : index
    %180 = vector.load %arg1[%c30, %c0_90, %c0_91, %c0_92] : memref<32x1x8x128xf32, #tpu.memory_space<vmem>>, vector<1x1x8x128xf32>
    %181 = vector.shape_cast %180 : vector<1x1x8x128xf32> to vector<1x8x128xf32>
    %182 = arith.mulf %181, %170 : vector<1x8x128xf32>
    %183 = arith.mulf %181, %173 : vector<1x8x128xf32>
    %184 = arith.mulf %181, %176 : vector<1x8x128xf32>
    %185 = arith.mulf %181, %179 : vector<1x8x128xf32>
    %186 = arith.addf %128, %182 : vector<1x8x128xf32>
    %187 = arith.addf %129, %183 : vector<1x8x128xf32>
    %188 = arith.addf %130, %184 : vector<1x8x128xf32>
    %189 = arith.addf %131, %185 : vector<1x8x128xf32>
    %c0_93 = arith.constant 0 : index
    %c0_94 = arith.constant 0 : index
    %190 = memref.load %arg2[%c0_93, %c0_94] : memref<4x4xf32, #tpu.memory_space<smem>>
    %191 = vector.broadcast %190 : f32 to vector<1x8x128xf32>
    %192 = arith.mulf %191, %186 : vector<1x8x128xf32>
    %c0_95 = arith.constant 0 : index
    %c1_96 = arith.constant 1 : index
    %193 = memref.load %arg2[%c0_95, %c1_96] : memref<4x4xf32, #tpu.memory_space<smem>>
    %194 = vector.broadcast %193 : f32 to vector<1x8x128xf32>
    %195 = arith.mulf %194, %187 : vector<1x8x128xf32>
    %196 = arith.addf %192, %195 : vector<1x8x128xf32>
    %c0_97 = arith.constant 0 : index
    %c2_98 = arith.constant 2 : index
    %197 = memref.load %arg2[%c0_97, %c2_98] : memref<4x4xf32, #tpu.memory_space<smem>>
    %198 = vector.broadcast %197 : f32 to vector<1x8x128xf32>
    %199 = arith.mulf %198, %188 : vector<1x8x128xf32>
    %200 = arith.addf %196, %199 : vector<1x8x128xf32>
    %c0_99 = arith.constant 0 : index
    %c3_100 = arith.constant 3 : index
    %201 = memref.load %arg2[%c0_99, %c3_100] : memref<4x4xf32, #tpu.memory_space<smem>>
    %202 = vector.broadcast %201 : f32 to vector<1x8x128xf32>
    %203 = arith.mulf %202, %189 : vector<1x8x128xf32>
    %204 = arith.addf %200, %203 : vector<1x8x128xf32>
    %c0_101 = arith.constant 0 : index
    %205 = memref.load %arg3[%c0_101] : memref<4xf32, #tpu.memory_space<smem>>
    %206 = vector.broadcast %205 : f32 to vector<1x8x128xf32>
    %207 = arith.addf %204, %206 : vector<1x8x128xf32>
    %c0_102 = arith.constant 0 : index
    %c0_103 = arith.constant 0 : index
    %c0_104 = arith.constant 0 : index
    %c0_105 = arith.constant 0 : index
    %208 = vector.load %arg4[%c0_102, %c0_103, %c0_104, %c0_105] : memref<4x1x8x128xf32, #tpu.memory_space<vmem>>, vector<1x1x8x128xf32>
    %209 = vector.shape_cast %208 : vector<1x1x8x128xf32> to vector<1x8x128xf32>
    %210 = vector.shape_cast %207 : vector<1x8x128xf32> to vector<1x1x8x128xf32>
    tpu.vector_store %arg4[%c0_102, %c0_103, %c0_104, %c0_105], %210 {strides = array<i32>} : memref<4x1x8x128xf32, #tpu.memory_space<vmem>>, vector<1x1x8x128xf32>,
    %c1_106 = arith.constant 1 : index
    %c0_107 = arith.constant 0 : index
    %211 = memref.load %arg2[%c1_106, %c0_107] : memref<4x4xf32, #tpu.memory_space<smem>>
    %212 = vector.broadcast %211 : f32 to vector<1x8x128xf32>
    %213 = arith.mulf %212, %186 : vector<1x8x128xf32>
    %c1_108 = arith.constant 1 : index
    %c1_109 = arith.constant 1 : index
    %214 = memref.load %arg2[%c1_108, %c1_109] : memref<4x4xf32, #tpu.memory_space<smem>>
    %215 = vector.broadcast %214 : f32 to vector<1x8x128xf32>
    %216 = arith.mulf %215, %187 : vector<1x8x128xf32>
    %217 = arith.addf %213, %216 : vector<1x8x128xf32>
    %c1_110 = arith.constant 1 : index
    %c2_111 = arith.constant 2 : index
    %218 = memref.load %arg2[%c1_110, %c2_111] : memref<4x4xf32, #tpu.memory_space<smem>>
    %219 = vector.broadcast %218 : f32 to vector<1x8x128xf32>
    %220 = arith.mulf %219, %188 : vector<1x8x128xf32>
    %221 = arith.addf %217, %220 : vector<1x8x128xf32>
    %c1_112 = arith.constant 1 : index
    %c3_113 = arith.constant 3 : index
    %222 = memref.load %arg2[%c1_112, %c3_113] : memref<4x4xf32, #tpu.memory_space<smem>>
    %223 = vector.broadcast %222 : f32 to vector<1x8x128xf32>
    %224 = arith.mulf %223, %189 : vector<1x8x128xf32>
    %225 = arith.addf %221, %224 : vector<1x8x128xf32>
    %c1_114 = arith.constant 1 : index
    %226 = memref.load %arg3[%c1_114] : memref<4xf32, #tpu.memory_space<smem>>
    %227 = vector.broadcast %226 : f32 to vector<1x8x128xf32>
    %228 = arith.addf %225, %227 : vector<1x8x128xf32>
    %c1_115 = arith.constant 1 : index
    %c0_116 = arith.constant 0 : index
    %c0_117 = arith.constant 0 : index
    %c0_118 = arith.constant 0 : index
    %229 = vector.load %arg4[%c1_115, %c0_116, %c0_117, %c0_118] : memref<4x1x8x128xf32, #tpu.memory_space<vmem>>, vector<1x1x8x128xf32>
    %230 = vector.shape_cast %229 : vector<1x1x8x128xf32> to vector<1x8x128xf32>
    %231 = vector.shape_cast %228 : vector<1x8x128xf32> to vector<1x1x8x128xf32>
    tpu.vector_store %arg4[%c1_115, %c0_116, %c0_117, %c0_118], %231 {strides = array<i32>} : memref<4x1x8x128xf32, #tpu.memory_space<vmem>>, vector<1x1x8x128xf32>,
    %c2_119 = arith.constant 2 : index
    %c0_120 = arith.constant 0 : index
    %232 = memref.load %arg2[%c2_119, %c0_120] : memref<4x4xf32, #tpu.memory_space<smem>>
    %233 = vector.broadcast %232 : f32 to vector<1x8x128xf32>
    %234 = arith.mulf %233, %186 : vector<1x8x128xf32>
    %c2_121 = arith.constant 2 : index
    %c1_122 = arith.constant 1 : index
    %235 = memref.load %arg2[%c2_121, %c1_122] : memref<4x4xf32, #tpu.memory_space<smem>>
    %236 = vector.broadcast %235 : f32 to vector<1x8x128xf32>
    %237 = arith.mulf %236, %187 : vector<1x8x128xf32>
    %238 = arith.addf %234, %237 : vector<1x8x128xf32>
    %c2_123 = arith.constant 2 : index
    %c2_124 = arith.constant 2 : index
    %239 = memref.load %arg2[%c2_123, %c2_124] : memref<4x4xf32, #tpu.memory_space<smem>>
    %240 = vector.broadcast %239 : f32 to vector<1x8x128xf32>
    %241 = arith.mulf %240, %188 : vector<1x8x128xf32>
    %242 = arith.addf %238, %241 : vector<1x8x128xf32>
    %c2_125 = arith.constant 2 : index
    %c3_126 = arith.constant 3 : index
    %243 = memref.load %arg2[%c2_125, %c3_126] : memref<4x4xf32, #tpu.memory_space<smem>>
    %244 = vector.broadcast %243 : f32 to vector<1x8x128xf32>
    %245 = arith.mulf %244, %189 : vector<1x8x128xf32>
    %246 = arith.addf %242, %245 : vector<1x8x128xf32>
    %c2_127 = arith.constant 2 : index
    %247 = memref.load %arg3[%c2_127] : memref<4xf32, #tpu.memory_space<smem>>
    %248 = vector.broadcast %247 : f32 to vector<1x8x128xf32>
    %249 = arith.addf %246, %248 : vector<1x8x128xf32>
    %c2_128 = arith.constant 2 : index
    %c0_129 = arith.constant 0 : index
    %c0_130 = arith.constant 0 : index
    %c0_131 = arith.constant 0 : index
    %250 = vector.load %arg4[%c2_128, %c0_129, %c0_130, %c0_131] : memref<4x1x8x128xf32, #tpu.memory_space<vmem>>, vector<1x1x8x128xf32>
    %251 = vector.shape_cast %250 : vector<1x1x8x128xf32> to vector<1x8x128xf32>
    %252 = vector.shape_cast %249 : vector<1x8x128xf32> to vector<1x1x8x128xf32>
    tpu.vector_store %arg4[%c2_128, %c0_129, %c0_130, %c0_131], %252 {strides = array<i32>} : memref<4x1x8x128xf32, #tpu.memory_space<vmem>>, vector<1x1x8x128xf32>,
    %c3_132 = arith.constant 3 : index
    %c0_133 = arith.constant 0 : index
    %253 = memref.load %arg2[%c3_132, %c0_133] : memref<4x4xf32, #tpu.memory_space<smem>>
    %254 = vector.broadcast %253 : f32 to vector<1x8x128xf32>
    %255 = arith.mulf %254, %186 : vector<1x8x128xf32>
    %c3_134 = arith.constant 3 : index
    %c1_135 = arith.constant 1 : index
    %256 = memref.load %arg2[%c3_134, %c1_135] : memref<4x4xf32, #tpu.memory_space<smem>>
    %257 = vector.broadcast %256 : f32 to vector<1x8x128xf32>
    %258 = arith.mulf %257, %187 : vector<1x8x128xf32>
    %259 = arith.addf %255, %258 : vector<1x8x128xf32>
    %c3_136 = arith.constant 3 : index
    %c2_137 = arith.constant 2 : index
    %260 = memref.load %arg2[%c3_136, %c2_137] : memref<4x4xf32, #tpu.memory_space<smem>>
    %261 = vector.broadcast %260 : f32 to vector<1x8x128xf32>
    %262 = arith.mulf %261, %188 : vector<1x8x128xf32>
    %263 = arith.addf %259, %262 : vector<1x8x128xf32>
    %c3_138 = arith.constant 3 : index
    %c3_139 = arith.constant 3 : index
    %264 = memref.load %arg2[%c3_138, %c3_139] : memref<4x4xf32, #tpu.memory_space<smem>>
    %265 = vector.broadcast %264 : f32 to vector<1x8x128xf32>
    %266 = arith.mulf %265, %189 : vector<1x8x128xf32>
    %267 = arith.addf %263, %266 : vector<1x8x128xf32>
    %c3_140 = arith.constant 3 : index
    %268 = memref.load %arg3[%c3_140] : memref<4xf32, #tpu.memory_space<smem>>
    %269 = vector.broadcast %268 : f32 to vector<1x8x128xf32>
    %270 = arith.addf %267, %269 : vector<1x8x128xf32>
    %c3_141 = arith.constant 3 : index
    %c0_142 = arith.constant 0 : index
    %c0_143 = arith.constant 0 : index
    %c0_144 = arith.constant 0 : index
    %271 = vector.load %arg4[%c3_141, %c0_142, %c0_143, %c0_144] : memref<4x1x8x128xf32, #tpu.memory_space<vmem>>, vector<1x1x8x128xf32>
    %272 = vector.shape_cast %271 : vector<1x1x8x128xf32> to vector<1x8x128xf32>
    %273 = vector.shape_cast %270 : vector<1x8x128xf32> to vector<1x1x8x128xf32>
    tpu.vector_store %arg4[%c3_141, %c0_142, %c0_143, %c0_144], %273 {strides = array<i32>} : memref<4x1x8x128xf32, #tpu.memory_space<vmem>>, vector<1x1x8x128xf32>,
    return
  }
  func.func @transform_0(%arg0: i32) -> (i32, i32, i32, i32) {
    %c0_i32 = arith.constant 0 : i32
    %c0_i32_0 = arith.constant 0 : i32
    %c0_i32_1 = arith.constant 0 : i32
    %c0_i32_2 = arith.constant 0 : i32
    return %c0_i32, %arg0, %c0_i32_0, %c0_i32_1 : i32, i32, i32, i32
  }
  func.func @transform_1(%arg0: i32) -> (i32, i32) {
    %c0_i32 = arith.constant 0 : i32
    %c0_i32_0 = arith.constant 0 : i32
    %c0_i32_1 = arith.constant 0 : i32
    return %c0_i32, %c0_i32_0 : i32, i32
  }
  func.func @transform_2(%arg0: i32) -> i32 {
    %c0_i32 = arith.constant 0 : i32
    %c0_i32_0 = arith.constant 0 : i32
    return %c0_i32 : i32
  }
  func.func @transform_3(%arg0: i32) -> (i32, i32, i32, i32) {
    %c0_i32 = arith.constant 0 : i32
    %c0_i32_0 = arith.constant 0 : i32
    %c0_i32_1 = arith.constant 0 : i32
    %c0_i32_2 = arith.constant 0 : i32
    return %c0_i32, %arg0, %c0_i32_0, %c0_i32_1 : i32, i32, i32, i32
  }
}

</mosaic_0001>

<bundles_post_ra>
// kernel: tpu_custom_call.1
= control target key start
LH: loop header
LB: loop body
LE: loop exit
PB: predicated region body
PF: predicated region fallthrough
CT: control target
= control target key end

     0   :  { %8 = vsyncpa [#allocation3], 0  ;;  %s657_s0 = inlined_call_operand.hbm [shape: f32[32,1,8,128], index: 0, kind: input, shape index: {}]   ;;  %s658_s1 = inlined_call_operand.hbm [shape: f32[4,4], index: 1, kind: input, shape index: {}]   ;;  %s659_s2 = inlined_call_operand.vmem [shape: f32[4], index: 2, kind: input, shape index: {}]   ;;  %s660_s3 = inlined_call_operand.hbm [shape: f32[4,1,8,128], index: 3, kind: output, shape index: {}]  }
   0x1   :  { %9 = vsyncpa [#allocation5], 0 }
   0x2   :  { %10 = vsyncpa [#allocation6], 0 }
   0x3   :  { %11 = vsyncpa [#allocation4], 0  ;;  %s437_s12 = smov [#allocation2]   ;;  %s363_s16 = scalar_lea.hbm %s657_s0, 4096 }
   0x4   :  { %s17_s13 = sshll.u32 %s437_s12, 4  ;;  %p364_p0 = scmp.ne.s32.totalorder %s657_s0, %s363_s16  ;;  %s18_s13 = int_to_ptr.vmem [resolvable:$true] %s17_s13 }
   0x5   :  { %p367_p1 = scmp.lt.u32.totalorder %s363_s16, %s657_s0 }
   0x7   :  { %p369_p2 = pnand %p367_p1, %p364_p0 }
   0x9   :  { %372 = shalt.err (!%p369_p2)
}
   0xa   :  { %s373_s21 = scalar_lea.vmem %s18_s13, 4096  ;;  %p378_p4 = scmp.lt.s32.totalorder %s18_s13, %s18_s13 }
   0xb   :  { %p374_p3 = scmp.ne.s32.totalorder %s18_s13, %s373_s21  ;;  %p379_p5 = scmp.lt.s32.totalorder %s373_s21, %s373_s21 }
   0xd   :  { %p380_p6 = por %p379_p5, %p378_p4 }
   0xf   :  { %p381_p7 = pnand %p380_p6, %p374_p3 }
  0x11   :  { %384 = shalt.err (!%p381_p7)
}
  0x12   :  { %s438_s22 = smov 128   ;;  %s439_s23 = smov 8  }
  0x13   :  { %23 = dma.hbm_to_vmem [thread:$0]  %s657_s0, 4096, %s18_s13, [#allocation3], %s438_s22, %s438_s22, %s439_s23  }
  0x14   :  { %s385_s28 = scalar_lea.hbm %s658_s1, 64 }
  0x15   :  { %p386_p8 = scmp.ne.s32.totalorder %s658_s1, %s385_s28  ;;  %p389_p9 = scmp.lt.u32.totalorder %s385_s28, %s658_s1 }
  0x17   :  { %p391_p10 = pnand %p389_p9, %p386_p8 }
  0x19   :  { %394 = shalt.err (!%p391_p10)
}
  0x1a   :  { %s440_s6 = smov [#allocation7]   ;;  %s38_s10 = sshll.u32 %s659_s2, 4  ;;  %s39_s10 = int_to_ptr.vmem [resolvable:$true] %s38_s10 }
  0x1b   :  { %31 = dma.hbm_to_smem %s658_s1, 64, %s440_s6, [#allocation5]  }
  0x1c   :  { %s395_s11 = scalar_lea.vmem %s39_s10, 16  ;;  %p400_p12 = scmp.lt.s32.totalorder %s39_s10, %s39_s10 }
  0x1d   :  { %p396_p11 = scmp.ne.s32.totalorder %s39_s10, %s395_s11  ;;  %p401_p13 = scmp.lt.s32.totalorder %s395_s11, %s395_s11 }
  0x1f   :  { %p402_p0 = por %p401_p13, %p400_p12 }
  0x21   :  { %p403_p1 = pnand %p402_p0, %p396_p11 }
  0x23   :  { %406 = shalt.err (!%p403_p1)
}
  0x24   :  { %s441_s12 = smov [#allocation8]  }
  0x25   :  { %41 = dma.vmem_to_smem %s39_s10, 16, %s441_s12, [#allocation6]  }
  0x26   :  { %429 = dma.done.wait [#allocation3], 4096  }
  0x27   :  { %430 = vsyncadd [#allocation3], 4294963200 }
  0x28   :  { %431 = dma.done.wait [#allocation5], 64  }
  0x29   :  { %432 = vsyncadd [#allocation5], 4294967232 }
  0x2a   :  { %433 = dma.done.wait [#allocation6], 16  }
  0x2b   :  { %434 = vsyncadd [#allocation6], 4294967280 }
  0x2c   :  { %51 = sfence }
  0x2d   :  { %v493_v0 = vld [vmem:[#allocation2] sm:$0xff]  ;;  %v495_v1 = vld [vmem:[#allocation2 + $0x8] sm:$0xff]  ;;  %v499_v3 = vld [vmem:[#allocation2 + $0x10] sm:$0xff]  ;;  %s574_s1 = sld [smem:[#allocation7]]  ;;  %s576_s2 = sld [smem:[#allocation7 + $0x1]] }
  0x2e   :  { %v497_v2 = vld [vmem:[#allocation2 + $0x20] sm:$0xff]  ;;  %v501_v4 = vld [vmem:[#allocation2 + $0x28] sm:$0xff]  ;;  %v503_v5 = vld [vmem:[#allocation2 + $0x30] sm:$0xff]  ;;  %s578_s13 = sld [smem:[#allocation7 + $0x80]]  ;;  %s582_s14 = sld [smem:[#allocation7 + $0x2]] }
  0x2f   :  { %v505_v6 = vld [vmem:[#allocation2 + $0x40] sm:$0xff]  ;;  %v507_v7 = vld [vmem:[#allocation2 + $0x18] sm:$0xff]  ;;  %v511_v9 = vld [vmem:[#allocation2 + $0x48] sm:$0xff]  ;;  %s584_s15 = sld [smem:[#allocation7 + $0x3]]  ;;  %s588_s16 = sld [smem:[#allocation7 + $0x81]] }
  0x30   :  { %v509_v8 = vld [vmem:[#allocation2 + $0x38] sm:$0xff]  ;;  %v513_v10 = vld [vmem:[#allocation2 + $0x60] sm:$0xff]  ;;  %v515_v11 = vld [vmem:[#allocation2 + $0x68] sm:$0xff]  ;;  %s590_s17 = sld [smem:[#allocation7 + $0x100]]  ;;  %s592_s18 = sld [smem:[#allocation7 + $0x82]] }
  0x31   :  { %v517_v12 = vld [vmem:[#allocation2 + $0x50] sm:$0xff]  ;;  %v84_v13 = vld [vmem:[#allocation2 + $0x80] sm:$0xff]  ;;  %v86_v14 = vld [vmem:[#allocation2 + $0x88] sm:$0xff]  ;;  %s595_s19 = sld [smem:[#allocation7 + $0x83]]  ;;  %s597_s20 = sld [smem:[#allocation7 + $0x101]] }
  0x32   :  { %v519_v15 = vld [vmem:[#allocation2 + $0x70] sm:$0xff]  ;;  %v90_v17 = vld [vmem:[#allocation2 + $0x98] sm:$0xff]  ;;  %v91_v18 = vmul.f32 %v84_v13, %v493_v0  ;;  %v92_v19 = vmul.f32 %v86_v14, %v497_v2  ;;  %v98_v20 = vmul.f32 %v84_v13, %v495_v1  ;;  %v99_v21 = vmul.f32 %v86_v14, %v501_v4  ;;  %v126_v32 = vld [vmem:[#allocation2 + $0xa0] sm:$0xff]  ;;  %s602_s21 = sld [smem:[#allocation7 + $0x102]]  ;;  %s604_s24 = sld [smem:[#allocation7 + $0x180]] }
  0x33   :  { %v88_v16 = vld [vmem:[#allocation2 + $0x90] sm:$0xff]  ;;  %v525_v22 = vld [vmem:[#allocation2 + $0x58] sm:$0xff]  ;;  %v96_v24 = vmul.f32 %v90_v17, %v513_v10  ;;  %v103_v26 = vmul.f32 %v90_v17, %v515_v11  ;;  %v105_v30 = vmul.f32 %v84_v13, %v499_v3  ;;  %v106_v31 = vmul.f32 %v86_v14, %v503_v5  ;;  %v128_v33 = vld [vmem:[#allocation2 + $0xa8] sm:$0xff]  ;;  %s608_s25 = sld [smem:[#allocation7 + $0x103]]  ;;  %s611_s26 = sld [smem:[#allocation7 + $0x181]] }
  0x34   :  { %v94_v23 = vmul.f32 %v88_v16, %v505_v6  ;;  %v101_v25 = vmul.f32 %v88_v16, %v511_v9  ;;  %v531_v27 = vld [vmem:[#allocation2 + $0x78] sm:$0xff]  ;;  %v93_v28 = vadd.f32 %v92_v19, %v91_v18  ;;  %v100_v29 = vadd.f32 %v99_v21, %v98_v20  ;;  %v130_v38 = vld [vmem:[#allocation2 + $0xb0] sm:$0xff]  ;;  %v120_v51 = vld [vmem:[#allocation2 + $0xe0] sm:$0xff]  ;;  %s613_s27 = sld [smem:[#allocation7 + $0x182]]  ;;  %s617_s28 = sld [smem:[#allocation7 + $0x183]] }
  0x35   :  { %v108_v34 = vmul.f32 %v88_v16, %v517_v12  ;;  %v110_v35 = vmul.f32 %v90_v17, %v519_v15  ;;  %v112_v36 = vmul.f32 %v84_v13, %v507_v7  ;;  %v113_v37 = vmul.f32 %v86_v14, %v509_v8  ;;  %v132_v43 = vld [vmem:[#allocation2 + $0xb8] sm:$0xff]  ;;  %v184_v21 = vld [vmem:[#allocation2 + $0xc0] sm:$0xff]  ;;  %s624_s29 = sld [smem:[#allocation8]]  ;;  %s626_s30 = sld [smem:[#allocation8 + $0x1]] }
  0x36   :  { %v95_v39 = vadd.f32 %v94_v23, %v93_v28  ;;  %v102_v40 = vadd.f32 %v101_v25, %v100_v29  ;;  %v107_v41 = vadd.f32 %v106_v31, %v105_v30  ;;  %v115_v42 = vmul.f32 %v88_v16, %v525_v22  ;;  %v186_v28 = vld [vmem:[#allocation2 + $0xc8] sm:$0xff]  ;;  %v188_v29 = vld [vmem:[#allocation2 + $0xd0] sm:$0xff]  ;;  %s629_s4 = sld [smem:[#allocation8 + $0x2]]  ;;  %s632_s5 = sld [smem:[#allocation8 + $0x3]] }
  0x37   :  { %v114_v44 = vadd.f32 %v113_v37, %v112_v36  ;;  %v117_v45 = vmul.f32 %v90_v17, %v531_v27  ;;  %v133_v46 = vmul.f32 %v126_v32, %v493_v0  ;;  %v134_v47 = vmul.f32 %v128_v33, %v497_v2  ;;  %s442_s6 = smov [#allocation9]  }
  0x38   :  { %v97_v48 = vadd.f32 %v96_v24, %v95_v39  ;;  %v104_v49 = vadd.f32 %v103_v26, %v102_v40  ;;  %v109_v50 = vadd.f32 %v108_v34, %v107_v41  ;;  %v136_v52 = vmul.f32 %v130_v38, %v505_v6  ;;  %v190_v40 = vld [vmem:[#allocation2 + $0xd8] sm:$0xff]  ;;  %s325_s7 = sshll.u32 %s442_s6, 4  ;;  %s326_s7 = int_to_ptr.vmem [resolvable:$true] %s325_s7 }
  0x39   :  { %v116_v53 = vadd.f32 %v115_v42, %v114_v44  ;;  %v135_v54 = vadd.f32 %v134_v47, %v133_v46  ;;  %v138_v55 = vmul.f32 %v132_v43, %v513_v10  ;;  %v140_v56 = vmul.f32 %v126_v32, %v495_v1  ;;  %s407_s8 = scalar_lea.vmem %s326_s7, 512  ;;  %p412_p3 = scmp.lt.s32.totalorder %s326_s7, %s326_s7 }
  0x3a   :  { %v111_v57 = vadd.f32 %v110_v35, %v109_v50  ;;  %v141_v58 = vmul.f32 %v128_v33, %v501_v4  ;;  %v547_v59 = vmul.f32 %v120_v51, %v97_v48  ;;  %v549_v60 = vmul.f32 %v120_v51, %v104_v49  ;;  %p408_p2 = scmp.ne.s32.totalorder %s326_s7, %s407_s8  ;;  %p413_p4 = scmp.lt.s32.totalorder %s407_s8, %s407_s8 }
  0x3b   :  { %v137_v61 = vadd.f32 %v136_v52, %v135_v54  ;;  %v143_v62 = vmul.f32 %v130_v38, %v511_v9  ;;  %v145_v13 = vmul.f32 %v132_v43, %v515_v11  ;;  %v147_v14 = vmul.f32 %v126_v32, %v499_v3 }
  0x3c   :  { %v142_v63 = vadd.f32 %v141_v58, %v140_v56  ;;  %v148_v16 = vmul.f32 %v128_v33, %v503_v5  ;;  %v118_v17 = vadd.f32 %v117_v45, %v116_v53  ;;  %v150_v19 = vmul.f32 %v130_v38, %v517_v12  ;;  %p414_p5 = por %p413_p4, %p412_p3 }
  0x3d   :  { %v139_v18 = vadd.f32 %v138_v55, %v137_v61  ;;  %v152_v20 = vmul.f32 %v132_v43, %v519_v15  ;;  %v154_v25 = vmul.f32 %v126_v32, %v507_v7  ;;  %v155_v26 = vmul.f32 %v128_v33, %v509_v8 }
  0x3e   :  { %v144_v23 = vadd.f32 %v143_v62, %v142_v63  ;;  %v149_v24 = vadd.f32 %v148_v16, %v147_v14  ;;  %v559_v30 = vmul.f32 %v120_v51, %v111_v57  ;;  %v157_v31 = vmul.f32 %v130_v38, %v525_v22  ;;  %p415_p6 = pnand %p414_p5, %p408_p2 }
  0x3f   :  { %v159_v34 = vmul.f32 %v132_v43, %v531_v27  ;;  %v161_v35 = vmul.f32 %v139_v18, %v97_v48  ;;  %v156_v39 = vadd.f32 %v155_v26, %v154_v25  ;;  %v191_v41 = vmul.f32 %v184_v21, %v493_v0  ;;  %v232_v26 = vld [vmem:[#allocation2 + $0xf0] sm:$0xff] }
  0x40   :  { %v146_v36 = vadd.f32 %v145_v13, %v144_v23  ;;  %v151_v37 = vadd.f32 %v150_v19, %v149_v24  ;;  %v164_v42 = vmul.f32 %v139_v18, %v104_v49  ;;  %v192_v32 = vmul.f32 %v186_v28, %v497_v2 }
  0x41   :  { %v194_v33 = vmul.f32 %v188_v29, %v505_v6  ;;  %v198_v44 = vmul.f32 %v184_v21, %v495_v1  ;;  %v158_v46 = vadd.f32 %v157_v31, %v156_v39  ;;  %v196_v43 = vmul.f32 %v190_v40, %v513_v10  ;;  %v174_v6 = vld [vmem:[#allocation2 + $0xe8] sm:$0xff] }
  0x42   :  { %v153_v45 = vadd.f32 %v152_v20, %v151_v37  ;;  %v162_v47 = vmul.f32 %v146_v36, %v111_v57  ;;  %v165_v38 = vmul.f32 %v146_v36, %v118_v17  ;;  %v193_v50 = vadd.f32 %v192_v32, %v191_v41 }
  0x43   :  { %v199_v52 = vmul.f32 %v186_v28, %v501_v4  ;;  %v201_v53 = vmul.f32 %v188_v29, %v511_v9  ;;  %v124_v54 = vmul.f32 %v120_v51, %v118_v17  ;;  %v160_v0 = vadd.f32 %v159_v34, %v158_v46 }
  0x44   :  { %v167_v55 = vmul.f32 %v153_v45, %v97_v48  ;;  %v203_v2 = vmul.f32 %v190_v40, %v515_v11  ;;  %v170_v56 = vmul.f32 %v153_v45, %v104_v49  ;;  %v195_v58 = vadd.f32 %v194_v33, %v193_v50 }
  0x45   :  { %v200_v1 = vadd.f32 %v199_v52, %v198_v44  ;;  %v205_v61 = vmul.f32 %v184_v21, %v499_v3  ;;  %v163_v62 = vadd.f32 %v162_v47, %v161_v35  ;;  %v166_v63 = vadd.f32 %v165_v38, %v164_v42 }
  0x46   :  { %v168_v13 = vmul.f32 %v160_v0, %v111_v57  ;;  %v171_v14 = vmul.f32 %v160_v0, %v118_v17  ;;  %v197_v10 = vadd.f32 %v196_v43, %v195_v58  ;;  %v206_v4 = vmul.f32 %v186_v28, %v503_v5 }
  0x47   :  { %v202_v16 = vadd.f32 %v201_v53, %v200_v1  ;;  %v208_v9 = vmul.f32 %v188_v29, %v517_v12  ;;  %v175_v49 = vmul.f32 %v174_v6, %v163_v62  ;;  %v176_v51 = vmul.f32 %v174_v6, %v166_v63 }
  0x48   :  { %v169_v11 = vadd.f32 %v168_v13, %v167_v55  ;;  %v172_v48 = vadd.f32 %v171_v14, %v170_v56  ;;  %v207_v18 = vadd.f32 %v206_v4, %v205_v61  ;;  %v210_v57 = vmul.f32 %v190_v40, %v519_v15 }
  0x49   :  { %v204_v3 = vadd.f32 %v203_v2, %v202_v16  ;;  %v212_v17 = vmul.f32 %v184_v21, %v507_v7  ;;  %v213_v19 = vmul.f32 %v186_v28, %v509_v8  ;;  %v215_v20 = vmul.f32 %v188_v29, %v525_v22 }
  0x4a   :  { %v177_v5 = vmul.f32 %v174_v6, %v169_v11  ;;  %v178_v12 = vmul.f32 %v174_v6, %v172_v48  ;;  %v209_v23 = vadd.f32 %v208_v9, %v207_v18  ;;  %v219_v24 = vmul.f32 %v197_v10, %v163_v62 }
  0x4b   :  { %v220_v25 = vmul.f32 %v204_v3, %v169_v11  ;;  %v214_v7 = vadd.f32 %v213_v19, %v212_v17  ;;  %v217_v15 = vmul.f32 %v190_v40, %v531_v27  ;;  %v222_v21 = vmul.f32 %v197_v10, %v166_v63 }
  0x4c   :  { %v179_v8 = vadd.f32 %v175_v49, %v547_v59  ;;  %v211_v22 = vadd.f32 %v210_v57, %v209_v23  ;;  %v223_v29 = vmul.f32 %v204_v3, %v172_v48  ;;  %v180_v31 = vadd.f32 %v176_v51, %v549_v60 }
  0x4d   :  { %v221_v28 = vadd.f32 %v220_v25, %v219_v24  ;;  %v181_v34 = vadd.f32 %v177_v5, %v559_v30  ;;  %v182_v35 = vadd.f32 %v178_v12, %v124_v54  ;;  %v216_v27 = vadd.f32 %v215_v20, %v214_v7 }
  0x4e   :  { %v224_v36 = vadd.f32 %v223_v29, %v222_v21  ;;  %v242_v39 = vstv %s574_s1  ;;  %v245_v59 = vstv %s576_s2  ;;  %v225_v60 = vmul.f32 %v211_v22, %v163_v62 }
  0x4f   :  { %v233_v37 = vmul.f32 %v232_v26, %v221_v28  ;;  %v218_v40 = vadd.f32 %v217_v15, %v216_v27  ;;  %v228_v41 = vmul.f32 %v211_v22, %v166_v63  ;;  %v261_v30 = vstv %s578_s13 }
  0x50   :  { %v234_v42 = vmul.f32 %v232_v26, %v224_v36  ;;  %v249_v33 = vstv %s582_s14  ;;  %v253_v44 = vstv %s584_s15  ;;  %v264_v47 = vstv %s588_s16 }
  0x51   :  { %v237_v32 = vadd.f32 %v233_v37, %v179_v8  ;;  %v226_v45 = vmul.f32 %v218_v40, %v169_v11  ;;  %v229_v46 = vmul.f32 %v218_v40, %v172_v48  ;;  %v281_v38 = vstv %s590_s17 }
  0x52   :  { %v238_v50 = vadd.f32 %v234_v42, %v180_v31  ;;  %v268_v53 = vstv %s592_s18  ;;  %v272_v55 = vstv %s595_s19  ;;  %v284_v2 = vstv %s597_s20 }
  0x53   :  { %v243_v43 = vmul.f32 %v242_v39, %v237_v32  ;;  %v262_v52 = vmul.f32 %v261_v30, %v237_v32  ;;  %v227_v54 = vadd.f32 %v226_v45, %v225_v60  ;;  %v230_v0 = vadd.f32 %v229_v46, %v228_v41 }
  0x54   :  { %v246_v56 = vmul.f32 %v245_v59, %v238_v50  ;;  %v265_v6 = vmul.f32 %v264_v47, %v238_v50  ;;  %v282_v58 = vmul.f32 %v281_v38, %v237_v32  ;;  %v285_v1 = vmul.f32 %v284_v2, %v238_v50 }
  0x55   :  { %v235_v61 = vmul.f32 %v232_v26, %v227_v54  ;;  %v236_v62 = vmul.f32 %v232_v26, %v230_v0  ;;  %v288_v63 = vstv %s602_s21  ;;  %v301_v13 = vstv %s604_s24 }
  0x56   :  { %v247_v14 = vadd.f32 %v246_v56, %v243_v43  ;;  %v266_v10 = vadd.f32 %v265_v6, %v262_v52  ;;  %v292_v16 = vstv %s608_s25  ;;  %v302_v4 = vmul.f32 %v301_v13, %v237_v32 }
  0x57   :  { %v239_v9 = vadd.f32 %v235_v61, %v181_v34  ;;  %v240_v11 = vadd.f32 %v236_v62, %v182_v35  ;;  %v304_v48 = vstv %s611_s26  ;;  %v308_v49 = vstv %s613_s27 }
  0x58   :  { %v286_v51 = vadd.f32 %v285_v1, %v282_v58  ;;  %v305_v3 = vmul.f32 %v304_v48, %v238_v50  ;;  %v312_v18 = vstv %s617_s28  ;;  %v257_v21 = vstv %s624_s29 }
  0x59   :  { %v250_v57 = vmul.f32 %v249_v33, %v239_v9  ;;  %v254_v17 = vmul.f32 %v253_v44, %v240_v11  ;;  %v269_v5 = vmul.f32 %v268_v53, %v239_v9  ;;  %v273_v12 = vmul.f32 %v272_v55, %v240_v11 }
  0x5a   :  { %v289_v19 = vmul.f32 %v288_v63, %v239_v9  ;;  %v293_v20 = vmul.f32 %v292_v16, %v240_v11  ;;  %v306_v23 = vadd.f32 %v305_v3, %v302_v4  ;;  %v309_v24 = vmul.f32 %v308_v49, %v239_v9 }
  0x5b   :  { %v251_v25 = vadd.f32 %v250_v57, %v247_v14  ;;  %v270_v7 = vadd.f32 %v269_v5, %v266_v10  ;;  %v313_v15 = vmul.f32 %v312_v18, %v240_v11  ;;  %v276_v26 = vstv %s626_s30 }
  0x5c   :  { %v290_v8 = vadd.f32 %v289_v19, %v286_v51  ;;  %v310_v22 = vadd.f32 %v309_v24, %v306_v23  ;;  %v296_v31 = vstv %s629_s4  ;;  %v316_v34 = vstv %s632_s5 }
  0x5d   :  { %v255_v28 = vadd.f32 %v254_v17, %v251_v25  ;;  %v274_v29 = vadd.f32 %v273_v12, %v270_v7 }
  0x5e   :  { %v294_v35 = vadd.f32 %v293_v20, %v290_v8  ;;  %v314_v27 = vadd.f32 %v313_v15, %v310_v22 }
  0x5f   :  { %v258_v36 = vadd.f32 %v257_v21, %v255_v28  ;;  %v277_v37 = vadd.f32 %v276_v26, %v274_v29 }
  0x60   :  { %v297_v39 = vadd.f32 %v296_v31, %v294_v35  ;;  %v317_v59 = vadd.f32 %v316_v34, %v314_v27 }
  0x61   :  { %259 = vst [vmem:[#allocation9] sm:$0xff] %v258_v36  ;;  %279 = vst [vmem:[#allocation9 + $0x8] sm:$0xff] %v277_v37 }
  0x62   :  { %299 = vst [vmem:[#allocation9 + $0x10] sm:$0xff] %v297_v39  ;;  %319 = vst [vmem:[#allocation9 + $0x18] sm:$0xff] %v317_v59 }
  0x63   :  { %418 = shalt.err (!%p415_p6)
}
  0x64   :  { %s419_s10 = scalar_lea.hbm %s660_s3, 512 }
  0x65   :  { %p420_p7 = scmp.ne.s32.totalorder %s660_s3, %s419_s10  ;;  %p423_p8 = scmp.lt.u32.totalorder %s419_s10, %s660_s3 }
  0x67   :  { %p425_p9 = pnand %p423_p8, %p420_p7 }
  0x69   :  { %428 = shalt.err (!%p425_p9)
}
  0x6a   :  { %331 = dma.vmem_to_hbm [thread:$0]  %s326_s7, 512, %s660_s3, [#allocation4], %s438_s22, %s438_s22, %s439_s23  }
  0x6b   :  { %435 = dma.done.wait [#allocation4], 512  }
  0x6c   :  { %436 = vsyncadd [#allocation4], 4294966784 }
  0x6d   :  { %335 = vsyncpa [#allocation3], 1 }
  0x6e   :  { %336 = vsyncpa [#allocation4], 1 }
  0x6f   :  { %337 = vsyncpa [#allocation5], 1 }
  0x70   :  { %338 = vsyncpa [#allocation6], 1 }

</bundles_post_ra>
